<compile_context>
chip_gen: v6e
topology: v6e:2x2x1
jax: 0.10.0
libtpu: 0.0.40
codegen_flags: <defaults>
</compile_context>

<pallas_src>
import functools

import jax
import jax.numpy as jnp
from jax.experimental import pallas as pl
from jax.experimental.pallas import tpu as pltpu


def _layernorm_kernel(x_ref, g_ref, b_ref, o_ref, *, eps, n_elems):
    # x_ref: (TN, D) block of TN samples, D = C*H*W (lane-dense)
    x = x_ref[...].astype(jnp.float32)

    # per-sample (row-wise) mean over all D elements
    mean = jnp.sum(x, axis=-1, keepdims=True) * (1.0 / n_elems)
    centered = x - mean

    # torch.std default is unbiased (ddof=1); module does (x - mean) / (std + eps)
    var = jnp.sum(centered * centered, axis=-1, keepdims=True) * (1.0 / (n_elems - 1.0))
    std = jnp.sqrt(var)

    # reciprocal goes to the EUP slot; the multiply fuses with the affine FMA path
    inv = pl.reciprocal(std + eps, approx=False)
    y = centered * inv

    # per-channel affine: gamma/beta arrive as a lane-dense (1, D) row (broadcast over TN)
    o_ref[...] = (y * g_ref[...] + b_ref[...]).astype(o_ref.dtype)


def layer_norm_pallas(x, gamma, beta, eps=1e-5):
    """x: (N, C, H, W) float32; gamma, beta: (C,). Matches the PyTorch module."""
    N, C, H, W = x.shape
    D = C * H * W
    x2 = x.reshape(N, D)

    # Pre-broadcast per-channel affine to one lane-dense row (done once, outside the kernel).
    g_row = jnp.broadcast_to(
        gamma.astype(jnp.float32).reshape(C, 1), (C, H * W)
    ).reshape(1, D)
    b_row = jnp.broadcast_to(
        beta.astype(jnp.float32).reshape(C, 1), (C, H * W)
    ).reshape(1, D)

    # Tile TN samples per grid step: multiple of 8 sublanes, a few MiB per buffer so
    # double-buffered in+out tiles fit comfortably even under v7x's smaller VMEM.
    row_bytes = D * 4
    max_tile_bytes = 4 * 1024 * 1024
    tn = max(8, min(512, (max_tile_bytes // row_bytes) // 8 * 8))
    tn = min(tn, ((N + 7) // 8) * 8)  # don't over-pad tiny batches

    n_pad = pl.cdiv(N, tn) * tn
    if n_pad != N:
        # Zero pad rows normalize to zeros (std=0 -> inv=1/eps, centered=0); sliced off below.
        x2 = jnp.pad(x2, ((0, n_pad - N), (0, 0)))

    kernel = functools.partial(_layernorm_kernel, eps=float(eps), n_elems=float(D))

    out = pl.pallas_call(
        kernel,
        out_shape=jax.ShapeDtypeStruct((n_pad, D), x.dtype),
        grid_spec=pltpu.PrefetchScalarGridSpec(
            num_scalar_prefetch=0,
            grid=(n_pad // tn,),
            in_specs=[
                pl.BlockSpec((tn, D), lambda i: (i, 0)),   # x tile: TN samples
                pl.BlockSpec((1, D), lambda i: (0, 0)),    # gamma row, VMEM-resident
                pl.BlockSpec((1, D), lambda i: (0, 0)),    # beta row, VMEM-resident
            ],
            out_specs=pl.BlockSpec((tn, D), lambda i: (i, 0)),
        ),
        compiler_params=pltpu.CompilerParams(
            dimension_semantics=("parallel",),          # batch axis shards across TCs
            vmem_limit_bytes=32 * 1024 * 1024,          # explicit, with headroom on all gens
        ),
        cost_estimate=pl.CostEstimate(
            flops=8 * n_pad * D,
            transcendentals=2 * n_pad,                  # sqrt + reciprocal per row
            bytes_accessed=2 * n_pad * D * 4,
        ),
    )(x2, g_row, b_row)

    if n_pad != N:
        out = out[:N]
    return out.reshape(N, C, H, W)


def layer_norm_ref(x, gamma, beta, eps=1e-5):
    N = x.shape[0]
    xf = x.reshape(N, -1)
    mean = xf.mean(axis=1).reshape(N, 1, 1, 1)
    std = jnp.sqrt(jnp.var(xf, axis=1, ddof=1)).reshape(N, 1, 1, 1)
    y = (x - mean) / (std + eps)
    return y * gamma.reshape(1, -1, 1, 1) + beta.reshape(1, -1, 1, 1)


if __name__ == "__main__":
    key = jax.random.PRNGKey(0)
    k_x, k_g = jax.random.split(key)

    N, C, H, W = 2, 4, 16, 16
    x = jax.random.normal(k_x, (N, C, H, W), dtype=jnp.float32)
    # nn.Parameter(torch.Tensor(num_features).uniform_()) -> uniform [0, 1)
    gamma = jax.random.uniform(k_g, (C,), dtype=jnp.float32)
    # beta initialized to zeros
    beta = jnp.zeros((C,), dtype=jnp.float32)

    out = layer_norm_pallas(x, gamma, beta, eps=1e-5)
    out = jax.block_until_ready(out)

    ref = layer_norm_ref(x, gamma, beta, eps=1e-5)
    assert jnp.allclose(out, ref, atol=1e-5, rtol=1e-5), "mismatch vs reference"

    print("KERNEL_OK")
</pallas_src>

<mosaic_0001>
module attributes {stable_mosaic.version = 11 : i64} {
  func.func @_layernorm_kernel(%arg0: i32, %arg1: memref<8x1024xf32, #tpu.memory_space<vmem>>, %arg2: memref<1x1024xf32, #tpu.memory_space<vmem>>, %arg3: memref<1x1024xf32, #tpu.memory_space<vmem>>, %arg4: memref<8x1024xf32, #tpu.memory_space<vmem>>) attributes {dimension_semantics = [#tpu.dimension_semantics<parallel>], iteration_bounds = array<i64: 1>, scalar_prefetch = 0 : i64, scratch_operands = 0 : i64, tpu.core_type = #tpu.core_type<tc>, window_params = [{transform_indices = @transform_0, window_bounds = array<i64: 8, 1024>}, {pipeline_mode = #tpu.pipeline_mode<synchronous>, transform_indices = @transform_1, window_bounds = array<i64: 1, 1024>}, {pipeline_mode = #tpu.pipeline_mode<synchronous>, transform_indices = @transform_2, window_bounds = array<i64: 1, 1024>}, {transform_indices = @transform_3, window_bounds = array<i64: 8, 1024>}]} {
    %c0 = arith.constant 0 : index
    %c0_0 = arith.constant 0 : index
    %0 = vector.load %arg1[%c0, %c0_0] : memref<8x1024xf32, #tpu.memory_space<vmem>>, vector<8x1024xf32>
    %cst = arith.constant dense<0.000000e+00> : vector<8xf32>
    %1 = vector.multi_reduction <add>, %0, %cst [1] : vector<8x1024xf32> to vector<8xf32>
    %2 = vector.shape_cast %1 : vector<8xf32> to vector<8x1xf32>
    %cst_1 = arith.constant 9.765625E-4 : f32
    %3 = vector.broadcast %cst_1 : f32 to vector<8x1xf32>
    %4 = arith.mulf %2, %3 : vector<8x1xf32>
    %5 = vector.broadcast %4 : vector<8x1xf32> to vector<8x1024xf32>
    %6 = arith.subf %0, %5 : vector<8x1024xf32>
    %7 = arith.mulf %6, %6 : vector<8x1024xf32>
    %cst_2 = arith.constant dense<0.000000e+00> : vector<8xf32>
    %8 = vector.multi_reduction <add>, %7, %cst_2 [1] : vector<8x1024xf32> to vector<8xf32>
    %9 = vector.shape_cast %8 : vector<8xf32> to vector<8x1xf32>
    %cst_3 = arith.constant 9.77517105E-4 : f32
    %10 = vector.broadcast %cst_3 : f32 to vector<8x1xf32>
    %11 = arith.mulf %9, %10 : vector<8x1xf32>
    %12 = math.sqrt %11 : vector<8x1xf32>
    %cst_4 = arith.constant 9.99999974E-6 : f32
    %13 = vector.broadcast %cst_4 : f32 to vector<8x1xf32>
    %14 = arith.addf %12, %13 : vector<8x1xf32>
    %15 = tpu.reciprocal %14 : vector<8x1xf32> -> vector<8x1xf32>
    %16 = vector.broadcast %15 : vector<8x1xf32> to vector<8x1024xf32>
    %17 = arith.mulf %6, %16 : vector<8x1024xf32>
    %c0_5 = arith.constant 0 : index
    %c0_6 = arith.constant 0 : index
    %18 = vector.load %arg2[%c0_5, %c0_6] : memref<1x1024xf32, #tpu.memory_space<vmem>>, vector<1x1024xf32>
    %19 = vector.broadcast %18 : vector<1x1024xf32> to vector<8x1024xf32>
    %20 = arith.mulf %17, %19 : vector<8x1024xf32>
    %c0_7 = arith.constant 0 : index
    %c0_8 = arith.constant 0 : index
    %21 = vector.load %arg3[%c0_7, %c0_8] : memref<1x1024xf32, #tpu.memory_space<vmem>>, vector<1x1024xf32>
    %22 = vector.broadcast %21 : vector<1x1024xf32> to vector<8x1024xf32>
    %23 = arith.addf %20, %22 : vector<8x1024xf32>
    %c0_9 = arith.constant 0 : index
    %c0_10 = arith.constant 0 : index
    %24 = vector.load %arg4[%c0_9, %c0_10] : memref<8x1024xf32, #tpu.memory_space<vmem>>, vector<8x1024xf32>
    tpu.vector_store %arg4[%c0_9, %c0_10], %23 {strides = array<i32>} : memref<8x1024xf32, #tpu.memory_space<vmem>>, vector<8x1024xf32>,
    return
  }
  func.func @transform_0(%arg0: i32) -> (i32, i32) {
    %c0_i32 = arith.constant 0 : i32
    %c0_i32_0 = arith.constant 0 : i32
    return %arg0, %c0_i32 : i32, i32
  }
  func.func @transform_1(%arg0: i32) -> (i32, i32) {
    %c0_i32 = arith.constant 0 : i32
    %c0_i32_0 = arith.constant 0 : i32
    %c0_i32_1 = arith.constant 0 : i32
    return %c0_i32, %c0_i32_0 : i32, i32
  }
  func.func @transform_2(%arg0: i32) -> (i32, i32) {
    %c0_i32 = arith.constant 0 : i32
    %c0_i32_0 = arith.constant 0 : i32
    %c0_i32_1 = arith.constant 0 : i32
    return %c0_i32, %c0_i32_0 : i32, i32
  }
  func.func @transform_3(%arg0: i32) -> (i32, i32) {
    %c0_i32 = arith.constant 0 : i32
    %c0_i32_0 = arith.constant 0 : i32
    return %arg0, %c0_i32 : i32, i32
  }
}

</mosaic_0001>

<bundles_post_ra>
// kernel: tpu_custom_call.1
= control target key start
LH: loop header
LB: loop body
LE: loop exit
PB: predicated region body
PF: predicated region fallthrough
CT: control target
= control target key end

     0   :  { %8 = vsyncpa [#allocation3], 0  ;;  %s390_s0 = inlined_call_operand.hbm [shape: f32[8,1024], index: 0, kind: input, shape index: {}]   ;;  %s391_s1 = inlined_call_operand.hbm [shape: f32[1,1024], index: 1, kind: input, shape index: {}]   ;;  %s392_s2 = inlined_call_operand.hbm [shape: f32[1,1024], index: 2, kind: input, shape index: {}]   ;;  %s393_s3 = inlined_call_operand.hbm [shape: f32[8,1024], index: 3, kind: output, shape index: {}]  }
   0x1   :  { %9 = vsyncpa [#allocation6], 0 }
   0x2   :  { %10 = vsyncpa [#allocation4], 0  ;;  %s329_s12 = smov [#allocation5]   ;;  %s330_s14 = smov [#allocation2]  }
   0x3   :  { %s27_s13 = sshll.u32 %s329_s12, 4  ;;  %s17_s15 = sshll.u32 %s330_s14, 4  ;;  %s28_s13 = int_to_ptr.vmem [resolvable:$true] %s27_s13  ;;  %s18_s15 = int_to_ptr.vmem [resolvable:$true] %s17_s15 }
   0x4   :  { %s251_s16 = scalar_lea.vmem %s28_s13, 128  ;;  %p256_p1 = scmp.lt.s32.totalorder %s28_s13, %s28_s13 }
   0x5   :  { %p252_p0 = scmp.ne.s32.totalorder %s28_s13, %s251_s16  ;;  %p257_p2 = scmp.lt.s32.totalorder %s251_s16, %s251_s16 }
   0x7   :  { %p258_p3 = por %p257_p2, %p256_p1 }
   0x9   :  { %p259_p4 = pnand %p258_p3, %p252_p0 }
   0xb   :  { %262 = shalt.err (!%p259_p4)
}
   0xc   :  { %30 = dma.hbm_to_vmem [thread:$0]  %s391_s1, 128, %s28_s13, [#allocation6]  }
   0xd   :  { %s271_s19 = scalar_lea.vmem %s18_s15, 1024  ;;  %p276_p6 = scmp.lt.s32.totalorder %s18_s15, %s18_s15 }
   0xe   :  { %p272_p5 = scmp.ne.s32.totalorder %s18_s15, %s271_s19  ;;  %p277_p7 = scmp.lt.s32.totalorder %s271_s19, %s271_s19 }
  0x10   :  { %p278_p8 = por %p277_p7, %p276_p6 }
  0x12   :  { %p279_p9 = pnand %p278_p8, %p272_p5 }
  0x14   :  { %282 = shalt.err (!%p279_p9)
}
  0x15   :  { %20 = dma.hbm_to_vmem [thread:$0]  %s390_s0, 1024, %s18_s15, [#allocation3]  }
  0x16   :  { %s331_s22 = smov [#allocation7]  }
  0x17   :  { %s37_s23 = sshll.u32 %s331_s22, 4  ;;  %s38_s23 = int_to_ptr.vmem [resolvable:$true] %s37_s23 }
  0x18   :  { %s291_s24 = scalar_lea.vmem %s38_s23, 128  ;;  %p296_p11 = scmp.lt.s32.totalorder %s38_s23, %s38_s23 }
  0x19   :  { %p292_p10 = scmp.ne.s32.totalorder %s38_s23, %s291_s24  ;;  %p297_p12 = scmp.lt.s32.totalorder %s291_s24, %s291_s24 }
  0x1b   :  { %p298_p13 = por %p297_p12, %p296_p11 }
  0x1d   :  { %p299_p0 = pnand %p298_p13, %p292_p10 }
  0x1f   :  { %302 = shalt.err (!%p299_p0)
}
  0x20   :  { %40 = dma.hbm_to_vmem [thread:$0]  %s392_s2, 128, %s38_s23, [#allocation6]  }
  0x21   :  { %323 = dma.done.wait [#allocation3], 1024  }
  0x22   :  { %324 = vsyncadd [#allocation3], 4294966272 }
  0x23   :  { %325 = dma.done.wait [#allocation6], 256  }
  0x24   :  { %326 = vsyncadd [#allocation6], 4294967040  ;;  %v50_v0 = vld [vmem:[#allocation2] sm:$0xff]  ;;  %v51_v1 = vld [vmem:[#allocation2 + $0x8] sm:$0xff]  ;;  %v113_v48 = vlaneseq  ;;  %s332_s0 = smov [#allocation8]  }
  0x25   :  { %v52_v2 = vld [vmem:[#allocation2 + $0x10] sm:$0xff]  ;;  %v58_v3 = vadd.f32 %v51_v1, %v50_v0  ;;  %v53_v4 = vld [vmem:[#allocation2 + $0x18] sm:$0xff]  ;;  %v54_v6 = vld [vmem:[#allocation2 + $0x20] sm:$0xff]  ;;  %s225_s2 = sshll.u32 %s332_s0, 4  ;;  %s226_s2 = int_to_ptr.vmem [resolvable:$true] %s225_s2 }
  0x26   :  { %v55_v8 = vld [vmem:[#allocation2 + $0x28] sm:$0xff]  ;;  %v56_v10 = vld [vmem:[#allocation2 + $0x30] sm:$0xff]  ;;  %v57_v12 = vld [vmem:[#allocation2 + $0x38] sm:$0xff]  ;;  %v114_v49 = vshrl.u32 %v113_v48, 7  ;;  %s303_s26 = scalar_lea.vmem %s226_s2, 1024  ;;  %p308_p2 = scmp.lt.s32.totalorder %s226_s2, %s226_s2 }
  0x27   :  { %v59_v5 = vadd.f32 %v58_v3, %v52_v2  ;;  %v111_v54 = vld [vmem:[#allocation5] sm:$0xff]  ;;  %v161_v59 = vld [vmem:[#allocation7] sm:$0xff]  ;;  %p304_p1 = scmp.ne.s32.totalorder %s226_s2, %s303_s26  ;;  %p309_p3 = scmp.lt.s32.totalorder %s303_s26, %s303_s26 }
  0x28   :  { %v115_v50 = vsub.s32 0, %v114_v49  ;;  %v119_v51 = vsub.s32 1, %v114_v49  ;;  %v123_v52 = vsub.s32 2, %v114_v49  ;;  %v127_v53 = vsub.s32 3, %v114_v49 }
  0x29   :  { %v60_v7 = vadd.f32 %v59_v5, %v53_v4  ;;  %v131_v55 = vsub.s32 4, %v114_v49  ;;  %v135_v56 = vsub.s32 5, %v114_v49  ;;  %v139_v57 = vsub.s32 6, %v114_v49  ;;  %p310_p4 = por %p309_p3, %p308_p2 }
  0x2a   :  { %v143_v58 = vsub.s32 7, %v114_v49  ;;  %v116_v60 = vrot.slane %v111_v54, %v115_v50  ;;  %v120_v61 = vrot.slane %v111_v54, %v119_v51  ;;  %v124_v62 = vrot.slane %v111_v54, %v123_v52 }
  0x2b   :  { %v61_v9 = vadd.f32 %v60_v7, %v54_v6  ;;  %v128_v63 = vrot.slane %v111_v54, %v127_v53  ;;  %v170_v5 = vrot.slane %v161_v59, %v119_v51  ;;  %v178_v7 = vrot.slane %v161_v59, %v127_v53  ;;  %p311_p5 = pnand %p310_p4, %p304_p1 }
  0x2c   :  { %v144_v3 = vrot.slane %v111_v54, %v143_v58 }
  0x2d   :  { %v62_v11 = vadd.f32 %v61_v9, %v55_v8  ;;  %v182_v9 = vrot.slane %v161_v59, %v131_v55 }
  0x2f   :  { %v63_v13 = vadd.f32 %v62_v11, %v56_v10  ;;  %v190_v11 = vrot.slane %v161_v59, %v139_v57 }
  0x31   :  { %v64_v14 = vadd.f32 %v63_v13, %v57_v12 }
  0x33   :  { %65 = vadd.xlane.f32.xlu0 %v64_v14 }
  0xbc   :  { %v66_v15 = vpop.xlane.xlu0 %65 }
  0xbd   :  { %v67_v16 = vmul.f32 0.0009765625, %v66_v15 }
  0xbf   :  { %v362_v17 = vsub.f32 %v50_v0, %v67_v16  ;;  %v364_v18 = vsub.f32 %v51_v1, %v67_v16  ;;  %v366_v19 = vsub.f32 %v52_v2, %v67_v16  ;;  %v368_v20 = vsub.f32 %v53_v4, %v67_v16 }
  0xc0   :  { %v374_v23 = vsub.f32 %v54_v6, %v67_v16  ;;  %v73_v26 = vsub.f32 %v55_v8, %v67_v16  ;;  %v74_v29 = vsub.f32 %v56_v10, %v67_v16  ;;  %v75_v32 = vsub.f32 %v57_v12, %v67_v16 }
  0xc1   :  { %v76_v21 = vmul.f32 %v362_v17, %v362_v17  ;;  %v77_v22 = vmul.f32 %v364_v18, %v364_v18  ;;  %v78_v24 = vmul.f32 %v366_v19, %v366_v19  ;;  %v79_v27 = vmul.f32 %v368_v20, %v368_v20 }
  0xc2   :  { %v80_v30 = vmul.f32 %v374_v23, %v374_v23  ;;  %v81_v33 = vmul.f32 %v73_v26, %v73_v26  ;;  %v82_v35 = vmul.f32 %v74_v29, %v74_v29  ;;  %v83_v37 = vmul.f32 %v75_v32, %v75_v32 }
  0xc3   :  { %v84_v25 = vadd.f32 %v77_v22, %v76_v21  ;;  %v132_v0 = vrot.slane %v111_v54, %v131_v55  ;;  %v136_v1 = vrot.slane %v111_v54, %v135_v56  ;;  %v140_v2 = vrot.slane %v111_v54, %v139_v57 }
  0xc4   :  { %v166_v4 = vrot.slane %v161_v59, %v115_v50  ;;  %v174_v6 = vrot.slane %v161_v59, %v123_v52  ;;  %v186_v10 = vrot.slane %v161_v59, %v135_v56  ;;  %v194_v12 = vrot.slane %v161_v59, %v143_v58 }
  0xc5   :  { %v85_v28 = vadd.f32 %v84_v25, %v78_v24 }
  0xc7   :  { %v86_v31 = vadd.f32 %v85_v28, %v79_v27 }
  0xc9   :  { %v87_v34 = vadd.f32 %v86_v31, %v80_v30 }
  0xcb   :  { %v88_v36 = vadd.f32 %v87_v34, %v81_v33 }
  0xcd   :  { %v89_v38 = vadd.f32 %v88_v36, %v82_v35 }
  0xcf   :  { %v90_v39 = vadd.f32 %v89_v38, %v83_v37 }
  0xd1   :  { %91 = vadd.xlane.f32.xlu0 %v90_v39 }
 0x15a   :  { %v92_v40 = vpop.xlane.xlu0 %91 }
 0x15b   :  { %v93_v41 = vmul.f32 0.0009775171, %v92_v40 }
 0x15d   :  { %239 = vrsqrt.f32 %v93_v41  ;;  %vm96_vm0 = vcmp.eq.f32.partialorder %v93_v41, inf  ;;  %v99_v44 = vand.u32 2147483648, %v93_v41  ;;  %vm98_vm1 = vcmp.eq.f32.partialorder %v93_v41, 0.0 }
 0x16a   :  { %v240_v42 = vpop.eup %239 }
 0x16b   :  { %v95_v43 = vmul.f32 %v240_v42, %v93_v41 }
 0x16d   :  { %v97_v45 = vsel %vm96_vm0, %v93_v41, %v95_v43 }
 0x16e   :  { %v100_v46 = vsel %vm98_vm1, %v99_v44, %v97_v45 }
 0x16f   :  { %v101_v47 = vadd.f32 1e-05, %v100_v46 }
 0x171   :  { %241 = vrcp.f32 %v101_v47 }
 0x17e   :  { %v242_v8 = vpop.eup %241 }
 0x17f   :  { %v103_v13 = vmul.f32 %v242_v8, %v362_v17  ;;  %v104_v14 = vmul.f32 %v242_v8, %v364_v18  ;;  %v105_v15 = vmul.f32 %v242_v8, %v366_v19  ;;  %v106_v16 = vmul.f32 %v242_v8, %v368_v20 }
 0x180   :  { %v107_v21 = vmul.f32 %v242_v8, %v374_v23  ;;  %v108_v22 = vmul.f32 %v242_v8, %v73_v26  ;;  %v109_v24 = vmul.f32 %v242_v8, %v74_v29  ;;  %v110_v25 = vmul.f32 %v242_v8, %v75_v32 }
 0x181   :  { %v153_v27 = vmul.f32 %v116_v60, %v103_v13  ;;  %v154_v28 = vmul.f32 %v120_v61, %v104_v14  ;;  %v155_v30 = vmul.f32 %v124_v62, %v105_v15  ;;  %v156_v31 = vmul.f32 %v128_v63, %v106_v16 }
 0x182   :  { %v157_v33 = vmul.f32 %v132_v0, %v107_v21  ;;  %v158_v34 = vmul.f32 %v136_v1, %v108_v22  ;;  %v159_v17 = vmul.f32 %v140_v2, %v109_v24  ;;  %v160_v35 = vmul.f32 %v144_v3, %v110_v25 }
 0x183   :  { %v203_v18 = vadd.f32 %v166_v4, %v153_v27  ;;  %v204_v36 = vadd.f32 %v170_v5, %v154_v28  ;;  %v205_v19 = vadd.f32 %v174_v6, %v155_v30  ;;  %v206_v37 = vadd.f32 %v178_v7, %v156_v31 }
 0x184   :  { %v207_v20 = vadd.f32 %v182_v9, %v157_v33  ;;  %v208_v38 = vadd.f32 %v186_v10, %v158_v34  ;;  %v209_v23 = vadd.f32 %v190_v11, %v159_v17  ;;  %v210_v26 = vadd.f32 %v194_v12, %v160_v35 }
 0x185   :  { %211 = vst [vmem:[#allocation8] sm:$0xff] %v203_v18  ;;  %212 = vst [vmem:[#allocation8 + $0x8] sm:$0xff] %v204_v36 }
 0x186   :  { %213 = vst [vmem:[#allocation8 + $0x10] sm:$0xff] %v205_v19  ;;  %214 = vst [vmem:[#allocation8 + $0x18] sm:$0xff] %v206_v37 }
 0x187   :  { %215 = vst [vmem:[#allocation8 + $0x20] sm:$0xff] %v207_v20  ;;  %216 = vst [vmem:[#allocation8 + $0x28] sm:$0xff] %v208_v38 }
 0x188   :  { %217 = vst [vmem:[#allocation8 + $0x30] sm:$0xff] %v209_v23  ;;  %218 = vst [vmem:[#allocation8 + $0x38] sm:$0xff] %v210_v26 }
 0x189   :  { %314 = shalt.err (!%p311_p5)
}
 0x18a   :  { %228 = dma.vmem_to_hbm [thread:$0]  %s226_s2, 1024, %s393_s3, [#allocation4]  }
 0x18b   :  { %327 = dma.done.wait [#allocation4], 1024  }
 0x18c   :  { %328 = vsyncadd [#allocation4], 4294966272 }
 0x18d   :  { %232 = vsyncpa [#allocation3], 1 }
 0x18e   :  { %233 = vsyncpa [#allocation6], 1 }
 0x18f   :  { %234 = vsyncpa [#allocation4], 1 }

</bundles_post_ra>
